<compile_context>
chip_gen: v7x
topology: tpu7x:2x2x1
jax: 0.10.0
libtpu: 0.0.40
codegen_flags: <defaults>
</compile_context>

<pallas_src>
import functools

import jax
import jax.numpy as jnp
from jax.experimental import pallas as pl
from jax.experimental.pallas import tpu as pltpu


def _round_up(x, m):
    return ((x + m - 1) // m) * m


def _tpu_caps():
    """Best-effort chip capability probe; conservative (v7x-like) defaults."""
    kind = ""
    try:
        kind = (jax.devices()[0].device_kind or "").lower()
    except Exception:
        pass
    is_v5e = ("v5 lite" in kind) or ("v5e" in kind) or ("v5lite" in kind)
    is_v6 = "v6" in kind
    is_v7 = ("v7" in kind) or ("tpu7" in kind)
    vmem_cap = None
    try:
        vmem_cap = int(pltpu.get_tpu_info().vmem_capacity_bytes)
    except Exception:
        pass
    if vmem_cap is None:
        # Unknown: assume the small-VMEM case (v7x = 64 MiB per TensorCore).
        vmem_cap = (128 << 20) if (is_v5e or is_v6) else (64 << 20)
    return {
        "bf16_epilogue": bool(is_v6 or is_v7),   # v5e has no bf16 EUP/VPU path
        "two_tc": bool(is_v7),                   # v7x: 2 TensorCores per chip
        "vmem_cap_bytes": vmem_cap,
    }


def _vector_field_kernel(z_ref, w_ref, b_ref, dx_ref, out_ref, *,
                         h_pad, group, n_groups, compute_dtype, epilogue_dtype):
    """Fused  out = sum_c tanh(z @ W_c + b_c) * dX_c  for one batch tile."""
    z = z_ref[...]
    if z.dtype != compute_dtype:
        z = z.astype(compute_dtype)
    dx = dx_ref[...]                          # (TB, Cp)  f32
    gw = group * h_pad                        # lanes per MXU dot (multiple of 128)

    acc = jnp.zeros(out_ref.shape, dtype=jnp.float32)

    # Static unroll over channel groups: one MXU dot per group, epilogue
    # (bias, tanh on the EUP, per-channel dX FMA on the VPU) consumed
    # immediately so the live intermediate is only (TB, group*Hp).
    # TODO(synk): for very large channel counts switch to lax.fori_loop over
    #             uniform groups to bound vreg live ranges / compile time.
    for g in range(n_groups):
        lo = g * gw
        w_g = w_ref[:, lo:lo + gw]                                   # lane-aligned view
        if w_g.dtype != compute_dtype:
            w_g = w_g.astype(compute_dtype)
        s = jnp.dot(z, w_g, preferred_element_type=jnp.float32)     # (TB, gw) f32
        s = s + b_ref[:, lo:lo + gw]
        vf = jnp.tanh(s.astype(epilogue_dtype)).astype(jnp.float32)  # bf16 EUP on v6e/v7x
        for j in range(group):
            c = g * group + j
            acc = acc + vf[:, j * h_pad:(j + 1) * h_pad] * dx[:, c:c + 1]

    out_ref[...] = acc.astype(out_ref.dtype)


def vector_field_forward(z, w_kernel, b_kernel, control_grad, *,
                         hidden, channels, tile_b=None, channel_group=None,
                         use_bf16=True):
    """Pallas-fused forward of _VectorField (tensor branch).

    w_kernel : (hidden, channels*hidden) — column block c*hidden:(c+1)*hidden is
               the weight slice producing vector_field[:, :, c].
    b_kernel : (1, channels*hidden)
    """
    B = z.shape[0]
    CH = channels * hidden
    assert w_kernel.shape == (hidden, CH)
    assert b_kernel.shape == (1, CH)
    assert control_grad.shape == (B, channels)

    caps = _tpu_caps()
    compute_dtype = jnp.bfloat16 if use_bf16 else jnp.float32
    epilogue_dtype = jnp.bfloat16 if (use_bf16 and caps["bf16_epilogue"]) else jnp.float32

    # Lane-density: pad the per-channel output width to a multiple of 128 so
    # output stores are unmasked and every W / epilogue slice is (8,128)-aligned.
    h_pad = _round_up(hidden, 128)

    # Channel grouping: one MXU dot per group, targeting ~512 output lanes.
    if channel_group is None:
        channel_group = max(1, min(channels, 512 // h_pad))
    group = max(1, int(channel_group))
    c_pad = _round_up(channels, group)         # uniform groups (padded dX is zero)
    n_groups = c_pad // group

    # Host-side relayout / padding of W, b, dX (padding contributes exactly 0).
    w3 = w_kernel.reshape(hidden, channels, hidden)
    w3 = jnp.pad(w3, ((0, 0), (0, c_pad - channels), (0, h_pad - hidden)))
    w_k = w3.reshape(hidden, c_pad * h_pad).astype(compute_dtype)
    b3 = b_kernel.reshape(1, channels, hidden)
    b3 = jnp.pad(b3, ((0, 0), (0, c_pad - channels), (0, h_pad - hidden)))
    b_k = b3.reshape(1, c_pad * h_pad).astype(jnp.float32)

    z = z.astype(compute_dtype)                      # bf16 at the boundary: halves z HBM read
    dx = control_grad.astype(jnp.float32)
    dx = jnp.pad(dx, ((0, 0), (0, c_pad - channels)))

    # Batch tiling: default 512-row tiles (per-grid-step overhead amortized);
    # on v7x cap at ceil(B/2) so both TensorCores get at least one tile.
    if tile_b is None:
        tile_b = 512
    tile_b = max(8, _round_up(min(tile_b, _round_up(B, 8)), 8))
    if caps["two_tc"] and B > 8:
        tile_b = min(tile_b, max(8, _round_up(-(-B // 2), 8)))
    b_pad = _round_up(B, tile_b)
    if b_pad != B:
        z = jnp.pad(z, ((0, b_pad - B), (0, 0)))
        dx = jnp.pad(dx, ((0, b_pad - B), (0, 0)))
    n_tiles = b_pad // tile_b

    # Generation-conditional VMEM budget (limit only; single-buffered W).
    itemsize = jnp.dtype(compute_dtype).itemsize
    est = (hidden * c_pad * h_pad * itemsize               # W (single-buffered)
           + c_pad * h_pad * 4                             # bias
           + 2 * tile_b * (hidden * itemsize + c_pad * 4 + h_pad * 4)   # z/dX/out tiles (2x)
           + 3 * tile_b * group * h_pad * 4)               # in-kernel temps headroom
    big_vmem = caps["vmem_cap_bytes"] >= (100 << 20)
    cap = (100 << 20) if big_vmem else (48 << 20)
    vmem_limit = int(min(cap, max(32 << 20, 2 * est)))

    kernel = functools.partial(
        _vector_field_kernel,
        h_pad=h_pad, group=group, n_groups=n_groups,
        compute_dtype=compute_dtype, epilogue_dtype=epilogue_dtype)

    def build(single_buffer_weights):
        w_kwargs = {"pipeline_mode": pl.Buffered(1)} if single_buffer_weights else {}
        return pl.pallas_call(
            kernel,
            out_shape=jax.ShapeDtypeStruct((b_pad, h_pad), jnp.float32),
            grid_spec=pltpu.PrefetchScalarGridSpec(
                num_scalar_prefetch=0,
                grid=(n_tiles,),
                in_specs=[
                    pl.BlockSpec((tile_b, hidden), lambda i: (i, 0)),        # z: batch-tiled
                    # W / b: constant index_map -> VMEM-resident across tiles;
                    # Buffered(1) keeps them single-buffered (v7x VMEM).
                    pl.BlockSpec((hidden, c_pad * h_pad), lambda i: (0, 0), **w_kwargs),
                    pl.BlockSpec((1, c_pad * h_pad), lambda i: (0, 0), **w_kwargs),
                    pl.BlockSpec((tile_b, c_pad), lambda i: (i, 0)),         # dX: batch-tiled
                ],
                out_specs=pl.BlockSpec((tile_b, h_pad), lambda i: (i, 0)),
            ),
            compiler_params=pltpu.CompilerParams(
                dimension_semantics=("parallel",),   # batch tiles split across TCs (v7x)
                vmem_limit_bytes=vmem_limit,
            ),
        )

    try:
        out = jax.block_until_ready(build(True)(z, w_k, b_k, dx))
    except Exception:
        # Fallback: default (double-buffered) weight pipelining.
        out = jax.block_until_ready(build(False)(z, w_k, b_k, dx))

    return out[:B, :hidden]


def _reference(z, W3, b3, dx):
    """Pure-JAX reference following the PyTorch semantics exactly (f32)."""
    B, H = z.shape
    C = dx.shape[1]
    vf = jnp.tanh(z @ W3.reshape(H, H * C) + b3.reshape(H * C)).reshape(B, H, C)
    return jnp.squeeze(vf @ dx[:, :, None], axis=-1)


# TODO(synk): the `is_prod=True` branch calls an arbitrary user `func.prod`;
#             no generic Pallas equivalent, only the tensor path is implemented.
# TODO(synk): the tuple (`is_tensor=False`) branch is just this kernel mapped
#             over a pytree of (vector_field_, control_gradient_) pairs.
# TODO(synk): for a fixed-step ODE solve, fold the solver-step loop into an
#             extra 'arbitrary' grid axis (dX as (T, B, C), z carried in VMEM
#             scratch / input_output_aliases) so W/b are DMA'd once per solve
#             instead of once per step — largest end-to-end win for NODE/CDE.


if __name__ == "__main__":
    # ---- Check 1: exact semantics (f32 MXU + f32 epilogue), NODE-like shapes ----
    B, H, C, T = 8, 32, 4, 16
    key = jax.random.PRNGKey(0)
    k_z, k_w, k_b, k_path = jax.random.split(key, 4)

    z = jax.random.normal(k_z, (B, H), dtype=jnp.float32)
    W3 = jax.random.normal(k_w, (H, H, C), dtype=jnp.float32) * 0.1   # (in, H, C)
    b3 = jax.random.normal(k_b, (H, C), dtype=jnp.float32) * 0.1

    # Synthetic control path X (linear interpolation) and its derivative at t.
    path = jax.random.normal(k_path, (B, T, C), dtype=jnp.float32)
    t = 3.5
    seg = int(t)
    control_grad = path[:, seg + 1, :] - path[:, seg, :]              # (B, C), dt = 1

    # Kernel weight relayout: column block c*H:(c+1)*H == W3[:, :, c].
    w_kernel = jnp.transpose(W3, (0, 2, 1)).reshape(H, C * H)
    b_kernel = jnp.transpose(b3, (1, 0)).reshape(1, C * H)

    out_ref = _reference(z, W3, b3, control_grad)

    out_f32 = jax.block_until_ready(vector_field_forward(
        z, w_kernel, b_kernel, control_grad,
        hidden=H, channels=C, use_bf16=False))
    assert out_f32.shape == (B, H)
    assert jnp.allclose(out_f32, out_ref, atol=1e-5, rtol=1e-5), "f32 path mismatch"

    # ---- Check 2: bf16 MXU (+ bf16 epilogue on v6e/v7x) fast path ----
    out_bf16 = jax.block_until_ready(vector_field_forward(
        z, w_kernel, b_kernel, control_grad,
        hidden=H, channels=C, use_bf16=True))
    assert jnp.allclose(out_bf16, out_ref, atol=1e-1, rtol=5e-2), "bf16 path mismatch"

    # ---- Check 3: multi-tile batch grid, uneven padding, channel grouping ----
    B2, H2, C2 = 300, 128, 5
    k1, k2, k3, k4 = jax.random.split(jax.random.PRNGKey(0), 4)
    z2 = jax.random.normal(k1, (B2, H2), dtype=jnp.float32)
    W32 = jax.random.normal(k2, (H2, H2, C2), dtype=jnp.float32) * 0.05
    b32 = jax.random.normal(k3, (H2, C2), dtype=jnp.float32) * 0.05
    dx2 = jax.random.normal(k4, (B2, C2), dtype=jnp.float32)
    wk2 = jnp.transpose(W32, (0, 2, 1)).reshape(H2, C2 * H2)
    bk2 = jnp.transpose(b32, (1, 0)).reshape(1, C2 * H2)

    out2 = jax.block_until_ready(vector_field_forward(
        z2, wk2, bk2, dx2, hidden=H2, channels=C2, tile_b=128, use_bf16=True))
    out2_ref = _reference(z2, W32, b32, dx2)
    assert out2.shape == (B2, H2)
    assert jnp.allclose(out2, out2_ref, atol=1.5e-1, rtol=5e-2), "multi-tile mismatch"

    # ---- Check 4: default (large) batch tiling path, f32 for exactness ----
    out3 = jax.block_until_ready(vector_field_forward(
        z2, wk2, bk2, dx2, hidden=H2, channels=C2, use_bf16=False))
    assert jnp.allclose(out3, out2_ref, atol=1e-4, rtol=1e-4), "default-tile mismatch"

    print("KERNEL_OK")
</pallas_src>

<mosaic_0001>
module attributes {stable_mosaic.version = 11 : i64} {
  func.func @_vector_field_kernel(%arg0: i32, %arg1: memref<8x32xf32, #tpu.memory_space<vmem>>, %arg2: memref<32x512xf32, #tpu.memory_space<vmem>>, %arg3: memref<1x512xf32, #tpu.memory_space<vmem>>, %arg4: memref<8x4xf32, #tpu.memory_space<vmem>>, %arg5: memref<8x128xf32, #tpu.memory_space<vmem>>) attributes {dimension_semantics = [#tpu.dimension_semantics<parallel>], iteration_bounds = array<i64: 1>, scalar_prefetch = 0 : i64, scratch_operands = 0 : i64, tpu.core_type = #tpu.core_type<tc>, window_params = [{transform_indices = @transform_0, window_bounds = array<i64: 8, 32>}, {pipeline_mode = #tpu.pipeline_mode<synchronous>, transform_indices = @transform_1, window_bounds = array<i64: 32, 512>}, {pipeline_mode = #tpu.pipeline_mode<synchronous>, transform_indices = @transform_2, window_bounds = array<i64: 1, 512>}, {transform_indices = @transform_3, window_bounds = array<i64: 8, 4>}, {transform_indices = @transform_4, window_bounds = array<i64: 8, 128>}]} {
    %c0 = arith.constant 0 : index
    %c0_0 = arith.constant 0 : index
    %0 = vector.load %arg1[%c0, %c0_0] : memref<8x32xf32, #tpu.memory_space<vmem>>, vector<8x32xf32>
    %c0_1 = arith.constant 0 : index
    %c0_2 = arith.constant 0 : index
    %1 = vector.load %arg4[%c0_1, %c0_2] : memref<8x4xf32, #tpu.memory_space<vmem>>, vector<8x4xf32>
    %cst = arith.constant 0.000000e+00 : f32
    %2 = vector.broadcast %cst : f32 to vector<8x128xf32>
    %c0_3 = arith.constant 0 : index
    %c0_4 = arith.constant 0 : index
    %3 = vector.load %arg2[%c0_3, %c0_4] : memref<32x512xf32, #tpu.memory_space<vmem>>, vector<32x512xf32>
    %cst_5 = arith.constant dense<0.000000e+00> : vector<8x512xf32>
    %4 = tpu.matmul %0, %3, %cst_5 {dimension_numbers = #tpu.dot_dimension_numbers<[1], [0], [0], [1], [0, 0, 1, 1], [], []>} : vector<8x32xf32>, vector<32x512xf32>, vector<8x512xf32> -> vector<8x512xf32>
    %c0_6 = arith.constant 0 : index
    %c0_7 = arith.constant 0 : index
    %5 = vector.load %arg3[%c0_6, %c0_7] : memref<1x512xf32, #tpu.memory_space<vmem>>, vector<1x512xf32>
    %6 = vector.broadcast %5 : vector<1x512xf32> to vector<8x512xf32>
    %7 = arith.addf %4, %6 : vector<8x512xf32>
    %8 = math.tanh %7 : vector<8x512xf32>
    %9 = vector.extract_strided_slice %8 {offsets = [0, 0], sizes = [8, 128], strides = [1, 1]} : vector<8x512xf32> to vector<8x128xf32>
    %10 = vector.extract_strided_slice %1 {offsets = [0, 0], sizes = [8, 1], strides = [1, 1]} : vector<8x4xf32> to vector<8x1xf32>
    %11 = vector.broadcast %10 : vector<8x1xf32> to vector<8x128xf32>
    %12 = arith.mulf %9, %11 : vector<8x128xf32>
    %13 = arith.addf %2, %12 : vector<8x128xf32>
    %14 = vector.extract_strided_slice %8 {offsets = [0, 128], sizes = [8, 128], strides = [1, 1]} : vector<8x512xf32> to vector<8x128xf32>
    %15 = vector.extract_strided_slice %1 {offsets = [0, 1], sizes = [8, 1], strides = [1, 1]} : vector<8x4xf32> to vector<8x1xf32>
    %16 = vector.broadcast %15 : vector<8x1xf32> to vector<8x128xf32>
    %17 = arith.mulf %14, %16 : vector<8x128xf32>
    %18 = arith.addf %13, %17 : vector<8x128xf32>
    %19 = vector.extract_strided_slice %8 {offsets = [0, 256], sizes = [8, 128], strides = [1, 1]} : vector<8x512xf32> to vector<8x128xf32>
    %20 = vector.extract_strided_slice %1 {offsets = [0, 2], sizes = [8, 1], strides = [1, 1]} : vector<8x4xf32> to vector<8x1xf32>
    %21 = vector.broadcast %20 : vector<8x1xf32> to vector<8x128xf32>
    %22 = arith.mulf %19, %21 : vector<8x128xf32>
    %23 = arith.addf %18, %22 : vector<8x128xf32>
    %24 = vector.extract_strided_slice %8 {offsets = [0, 384], sizes = [8, 128], strides = [1, 1]} : vector<8x512xf32> to vector<8x128xf32>
    %25 = vector.extract_strided_slice %1 {offsets = [0, 3], sizes = [8, 1], strides = [1, 1]} : vector<8x4xf32> to vector<8x1xf32>
    %26 = vector.broadcast %25 : vector<8x1xf32> to vector<8x128xf32>
    %27 = arith.mulf %24, %26 : vector<8x128xf32>
    %28 = arith.addf %23, %27 : vector<8x128xf32>
    %c0_8 = arith.constant 0 : index
    %c0_9 = arith.constant 0 : index
    %29 = vector.load %arg5[%c0_8, %c0_9] : memref<8x128xf32, #tpu.memory_space<vmem>>, vector<8x128xf32>
    tpu.vector_store %arg5[%c0_8, %c0_9], %28 {strides = array<i32>} : memref<8x128xf32, #tpu.memory_space<vmem>>, vector<8x128xf32>,
    return
  }
  func.func @transform_0(%arg0: i32) -> (i32, i32) {
    %c0_i32 = arith.constant 0 : i32
    %c0_i32_0 = arith.constant 0 : i32
    return %arg0, %c0_i32 : i32, i32
  }
  func.func @transform_1(%arg0: i32) -> (i32, i32) {
    %c0_i32 = arith.constant 0 : i32
    %c0_i32_0 = arith.constant 0 : i32
    %c0_i32_1 = arith.constant 0 : i32
    return %c0_i32, %c0_i32_0 : i32, i32
  }
  func.func @transform_2(%arg0: i32) -> (i32, i32) {
    %c0_i32 = arith.constant 0 : i32
    %c0_i32_0 = arith.constant 0 : i32
    %c0_i32_1 = arith.constant 0 : i32
    return %c0_i32, %c0_i32_0 : i32, i32
  }
  func.func @transform_3(%arg0: i32) -> (i32, i32) {
    %c0_i32 = arith.constant 0 : i32
    %c0_i32_0 = arith.constant 0 : i32
    return %arg0, %c0_i32 : i32, i32
  }
  func.func @transform_4(%arg0: i32) -> (i32, i32) {
    %c0_i32 = arith.constant 0 : i32
    %c0_i32_0 = arith.constant 0 : i32
    return %arg0, %c0_i32 : i32, i32
  }
}

module attributes {stable_mosaic.version = 11 : i64} {
  func.func @_vector_field_kernel(%arg0: i32, %arg1: memref<8x32xf32, #tpu.memory_space<vmem>>, %arg2: memref<32x512xf32, #tpu.memory_space<vmem>>, %arg3: memref<1x512xf32, #tpu.memory_space<vmem>>, %arg4: memref<8x4xf32, #tpu.memory_space<vmem>>, %arg5: memref<8x128xf32, #tpu.memory_space<vmem>>) attributes {dimension_semantics = [#tpu.dimension_semantics<parallel>], iteration_bounds = array<i64: 1>, scalar_prefetch = 0 : i64, scratch_operands = 0 : i64, tpu.core_type = #tpu.core_type<tc>, window_params = [{transform_indices = @transform_0, window_bounds = array<i64: 8, 32>}, {pipeline_mode = #tpu.pipeline_mode<synchronous>, transform_indices = @transform_1, window_bounds = array<i64: 32, 512>}, {pipeline_mode = #tpu.pipeline_mode<synchronous>, transform_indices = @transform_2, window_bounds = array<i64: 1, 512>}, {transform_indices = @transform_3, window_bounds = array<i64: 8, 4>}, {transform_indices = @transform_4, window_bounds = array<i64: 8, 128>}]} {
    %c0 = arith.constant 0 : index
    %c0_0 = arith.constant 0 : index
    %0 = vector.load %arg1[%c0, %c0_0] : memref<8x32xf32, #tpu.memory_space<vmem>>, vector<8x32xf32>
    %c0_1 = arith.constant 0 : index
    %c0_2 = arith.constant 0 : index
    %1 = vector.load %arg4[%c0_1, %c0_2] : memref<8x4xf32, #tpu.memory_space<vmem>>, vector<8x4xf32>
    %cst = arith.constant 0.000000e+00 : f32
    %2 = vector.broadcast %cst : f32 to vector<8x128xf32>
    %c0_3 = arith.constant 0 : index
    %c0_4 = arith.constant 0 : index
    %3 = vector.load %arg2[%c0_3, %c0_4] : memref<32x512xf32, #tpu.memory_space<vmem>>, vector<32x512xf32>
    %cst_5 = arith.constant dense<0.000000e+00> : vector<8x512xf32>
    %4 = tpu.matmul %0, %3, %cst_5 {dimension_numbers = #tpu.dot_dimension_numbers<[1], [0], [0], [1], [0, 0, 1, 1], [], []>} : vector<8x32xf32>, vector<32x512xf32>, vector<8x512xf32> -> vector<8x512xf32>
    %c0_6 = arith.constant 0 : index
    %c0_7 = arith.constant 0 : index
    %5 = vector.load %arg3[%c0_6, %c0_7] : memref<1x512xf32, #tpu.memory_space<vmem>>, vector<1x512xf32>
    %6 = vector.broadcast %5 : vector<1x512xf32> to vector<8x512xf32>
    %7 = arith.addf %4, %6 : vector<8x512xf32>
    %8 = math.tanh %7 : vector<8x512xf32>
    %9 = vector.extract_strided_slice %8 {offsets = [0, 0], sizes = [8, 128], strides = [1, 1]} : vector<8x512xf32> to vector<8x128xf32>
    %10 = vector.extract_strided_slice %1 {offsets = [0, 0], sizes = [8, 1], strides = [1, 1]} : vector<8x4xf32> to vector<8x1xf32>
    %11 = vector.broadcast %10 : vector<8x1xf32> to vector<8x128xf32>
    %12 = arith.mulf %9, %11 : vector<8x128xf32>
    %13 = arith.addf %2, %12 : vector<8x128xf32>
    %14 = vector.extract_strided_slice %8 {offsets = [0, 128], sizes = [8, 128], strides = [1, 1]} : vector<8x512xf32> to vector<8x128xf32>
    %15 = vector.extract_strided_slice %1 {offsets = [0, 1], sizes = [8, 1], strides = [1, 1]} : vector<8x4xf32> to vector<8x1xf32>
    %16 = vector.broadcast %15 : vector<8x1xf32> to vector<8x128xf32>
    %17 = arith.mulf %14, %16 : vector<8x128xf32>
    %18 = arith.addf %13, %17 : vector<8x128xf32>
    %19 = vector.extract_strided_slice %8 {offsets = [0, 256], sizes = [8, 128], strides = [1, 1]} : vector<8x512xf32> to vector<8x128xf32>
    %20 = vector.extract_strided_slice %1 {offsets = [0, 2], sizes = [8, 1], strides = [1, 1]} : vector<8x4xf32> to vector<8x1xf32>
    %21 = vector.broadcast %20 : vector<8x1xf32> to vector<8x128xf32>
    %22 = arith.mulf %19, %21 : vector<8x128xf32>
    %23 = arith.addf %18, %22 : vector<8x128xf32>
    %24 = vector.extract_strided_slice %8 {offsets = [0, 384], sizes = [8, 128], strides = [1, 1]} : vector<8x512xf32> to vector<8x128xf32>
    %25 = vector.extract_strided_slice %1 {offsets = [0, 3], sizes = [8, 1], strides = [1, 1]} : vector<8x4xf32> to vector<8x1xf32>
    %26 = vector.broadcast %25 : vector<8x1xf32> to vector<8x128xf32>
    %27 = arith.mulf %24, %26 : vector<8x128xf32>
    %28 = arith.addf %23, %27 : vector<8x128xf32>
    %c0_8 = arith.constant 0 : index
    %c0_9 = arith.constant 0 : index
    %29 = vector.load %arg5[%c0_8, %c0_9] : memref<8x128xf32, #tpu.memory_space<vmem>>, vector<8x128xf32>
    tpu.vector_store %arg5[%c0_8, %c0_9], %28 {strides = array<i32>} : memref<8x128xf32, #tpu.memory_space<vmem>>, vector<8x128xf32>,
    return
  }
  func.func @transform_0(%arg0: i32) -> (i32, i32) {
    %c0_i32 = arith.constant 0 : i32
    %c0_i32_0 = arith.constant 0 : i32
    return %arg0, %c0_i32 : i32, i32
  }
  func.func @transform_1(%arg0: i32) -> (i32, i32) {
    %c0_i32 = arith.constant 0 : i32
    %c0_i32_0 = arith.constant 0 : i32
    %c0_i32_1 = arith.constant 0 : i32
    return %c0_i32, %c0_i32_0 : i32, i32
  }
  func.func @transform_2(%arg0: i32) -> (i32, i32) {
    %c0_i32 = arith.constant 0 : i32
    %c0_i32_0 = arith.constant 0 : i32
    %c0_i32_1 = arith.constant 0 : i32
    return %c0_i32, %c0_i32_0 : i32, i32
  }
  func.func @transform_3(%arg0: i32) -> (i32, i32) {
    %c0_i32 = arith.constant 0 : i32
    %c0_i32_0 = arith.constant 0 : i32
    return %arg0, %c0_i32 : i32, i32
  }
  func.func @transform_4(%arg0: i32) -> (i32, i32) {
    %c0_i32 = arith.constant 0 : i32
    %c0_i32_0 = arith.constant 0 : i32
    return %arg0, %c0_i32 : i32, i32
  }
}

</mosaic_0001>

<bundles_post_ra>
// kernel: tpu_custom_call.1
= control target key start
LH: loop header
LB: loop body
LE: loop exit
PB: predicated region body
PF: predicated region fallthrough
CT: control target
= control target key end

     0   :  { %9 = vsyncpa [#allocation3], 0  ;;  %s418_s0 = inlined_call_operand.vmem [shape: f32[8,32], index: 0, kind: input, shape index: {}]   ;;  %s419_s1 = inlined_call_operand.hbm [shape: f32[32,512], index: 1, kind: input, shape index: {}]   ;;  %s420_s2 = inlined_call_operand.vmem [shape: f32[1,512], index: 2, kind: input, shape index: {}]   ;;  %s421_s3 = inlined_call_operand.vmem [shape: f32[8,4], index: 3, kind: input, shape index: {}]   ;;  %s422_s4 = inlined_call_operand.hbm [shape: f32[8,128], index: 4, kind: output, shape index: {}]  }
   0x1   :  { %10 = vsyncpa [#allocation4], 0  ;;  %s351_s15 = smov [#allocation2]   ;;  %s303_s19 = scalar_lea.hbm %s419_s1, 2048 }
   0x2   :  { %s18_s16 = sshll.u32 %s351_s15, 4  ;;  %p304_p0 = scmp.ne.s32.totalorder %s419_s1, %s303_s19  ;;  %s19_s16 = int_to_ptr.vmem [resolvable:$true] %s18_s16 }
   0x3   :  { %p307_p1 = scmp.lt.u32.totalorder %s303_s19, %s419_s1 }
   0x5   :  { %p309_p2 = pnand %p307_p1, %p304_p0 }
   0x7   :  { %312 = shalt.err (!%p309_p2)
}
   0x8   :  { %s313_s24 = scalar_lea.vmem %s19_s16, 2048  ;;  %p318_p4 = scmp.lt.s32.totalorder %s19_s16, %s19_s16 }
   0x9   :  { %p314_p3 = scmp.ne.s32.totalorder %s19_s16, %s313_s24  ;;  %p319_p5 = scmp.lt.s32.totalorder %s313_s24, %s313_s24 }
   0xb   :  { %p320_p6 = por %p319_p5, %p318_p4 }
   0xd   :  { %p321_p7 = pnand %p320_p6, %p314_p3 }
   0xf   :  { %324 = shalt.err (!%p321_p7)
}
  0x10   :  { %s352_s25 = smov 512   ;;  %s353_s26 = smov 32  }
  0x11   :  { %24 = dma.hbm_to_vmem [thread:$0]  %s419_s1, 2048, %s19_s16, [#allocation3], %s352_s25, %s352_s25, %s353_s26  }
  0x12   :  { %347 = dma.done.wait [#allocation3], 2048  }
  0x13   :  { %348 = vsyncadd [#allocation3], 4294965248  ;;  %v354_v0 = vmov 0.0   ;;  %v355_v1 = vmov 0   ;;  %v356_v2 = vmov 2   ;;  %v35_v3 = vld [vmem:[#allocation2 + $0x8] sm:$0xff]  ;;  %v52_v31 = vlaneseq }
  0x14   :  { %140 = vmatprep.mubr.f32.mxu0 %v354_v0  ;;  %211 = vmatprep.mubr.f32.mxu1 %v354_v0  ;;  %v39_v4 = vld [vmem:[#allocation2 + $0x28] sm:$0xff]  ;;  %v37_v5 = vld [vmem:[#allocation2 + $0x18] sm:$0xff]  ;;  %v34_v8 = vld [vmem:[#allocation2] sm:$0xff]  ;;  %vm72_vm0 = vcmask 261120   ;;  %v357_v29 = vmov 1   ;;  %v358_v30 = vmov 3  }
  0x15   :  { %290 = vset.pattern.permute.xlu0 %v355_v1  ;;  %292 = vset.pattern.permute.xlu1 %v356_v2  ;;  %v265_v6 = vpack.c.bf16 %v39_v4, %v35_v3  ;;  %v41_v7 = vld [vmem:[#allocation2 + $0x38] sm:$0xff]  ;;  %v38_v9 = vld [vmem:[#allocation2 + $0x20] sm:$0xff]  ;;  %v36_v12 = vld [vmem:[#allocation2 + $0x10] sm:$0xff]  ;;  %v53_v32 = vshrl.u32 %v52_v31, 7 }
  0x16   :  { %v273_v10 = vpack.c.bf16 %v41_v7, %v37_v5  ;;  %v267_v11 = vpack.c.bf16 %v38_v9, %v34_v8  ;;  %v40_v13 = vld [vmem:[#allocation2 + $0x30] sm:$0xff]  ;;  %v43_v14 = vld [vmem:[#allocation2 + $0x48] sm:$0xff]  ;;  %v45_v17 = vld [vmem:[#allocation2 + $0x58] sm:$0xff] }
  0x17   :  { %266 = vmatprep.subr.bf16.mxu0 %v265_v6  ;;  %v275_v15 = vpack.c.bf16 %v40_v13, %v36_v12  ;;  %v47_v16 = vld [vmem:[#allocation2 + $0x68] sm:$0xff]  ;;  %v49_v18 = vld [vmem:[#allocation2 + $0x78] sm:$0xff]  ;;  %v42_v21 = vld [vmem:[#allocation2 + $0x40] sm:$0xff]  ;;  %v54_v33 = vsub.s32 0, %v53_v32  ;;  %v62_v35 = vsub.s32 2, %v53_v32  ;;  %v58_v36 = vsub.s32 1, %v53_v32 }
  0x18   :  { %274 = vmatprep.subr.bf16.mxu1 %v273_v10  ;;  %268 = vmatpush1.bf16.msra.mxu0 %v267_v11  ;;  %v269_v19 = vpack.c.bf16 %v47_v16, %v43_v14  ;;  %v277_v20 = vpack.c.bf16 %v49_v18, %v45_v17  ;;  %v46_v22 = vld [vmem:[#allocation2 + $0x60] sm:$0xff]  ;;  %v44_v23 = vld [vmem:[#allocation2 + $0x50] sm:$0xff]  ;;  %v66_v37 = vsub.s32 3, %v53_v32 }
  0x19   :  { %276 = vmatpush1.bf16.msra.mxu1 %v275_v15  ;;  %v271_v24 = vpack.c.bf16 %v46_v22, %v42_v21  ;;  %v48_v25 = vld [vmem:[#allocation2 + $0x70] sm:$0xff]  ;;  %v33_v26 = vld [vmem:[%s421_s3] sm:$0xff] }
  0x1a   :  { %270 = vmatprep.subr.bf16.mxu0 %v269_v19  ;;  %278 = vmatprep.subr.bf16.mxu1 %v277_v20  ;;  %v279_v27 = vpack.c.bf16 %v48_v25, %v44_v23  ;;  %v32_v28 = vld [vmem:[%s418_s0] sm:$0xff]  ;;  %s359_s0 = smov [#allocation5]  }
  0x1b   :  { %224 = vperm.xlu0 %290, %v33_v26   ;;  %236 = vperm.xlu1 %292, %v33_v26   ;;  %v50_v34 = vld [vmem:[%s420_s2] sm:$0xf]  ;;  %s254_s2 = sshll.u32 %s359_s0, 4  ;;  %s255_s2 = int_to_ptr.vmem [resolvable:$true] %s254_s2 }
  0x1c   :  { %272 = vmatpush1.bf16.msra.mxu0 %v271_v24  ;;  %v55_v38 = vrot.slane %v50_v34, %v54_v33  ;;  %v63_v39 = vrot.slane %v50_v34, %v62_v35  ;;  %v59_v40 = vrot.slane %v50_v34, %v58_v36  ;;  %v67_v41 = vrot.slane %v50_v34, %v66_v37  ;;  %s325_s7 = scalar_lea.vmem %s255_s2, 128  ;;  %p330_p9 = scmp.lt.s32.totalorder %s255_s2, %s255_s2 }
  0x1d   :  { %280 = vmatpush1.bf16.msra.mxu1 %v279_v27  ;;  %p326_p8 = scmp.ne.s32.totalorder %s255_s2, %s325_s7  ;;  %p331_p10 = scmp.lt.s32.totalorder %s325_s7, %s325_s7 }
  0x1f   :  { %263 = vmatmul.mubr.msk.f32.vlgmr.msra.gmra.mrb[0].mxu0 %vm72_vm0, %v32_v28  ;;  %291 = vset.pattern.permute.xlu0 %v357_v29  ;;  %p332_p11 = por %p331_p10, %p330_p9 }
  0x20   :  { %264 = vmatmul.mubr.msk.f32.vlgmr.msra.gmra.mrb[0].mxu1 %vm72_vm0, %v32_v28  ;;  %230 = vperm.xlu0 %291, %v33_v26  }
  0x21   :  { %293 = vset.pattern.permute.xlu1 %v358_v30  ;;  %p333_p12 = pnand %p332_p11, %p326_p8 }
  0x22   :  { %242 = vperm.xlu1 %293, %v33_v26  }
  0x24   :  { %294 = vset.pattern.permute.xlu0 %v358_v30 }
  0x9a   :  { %v225_v50 = vpop.permute.xlu0 %224  ;;  %v237_v51 = vpop.permute.xlu1 %236 }
  0x9f   :  { %v231_v53 = vpop.permute.xlu0 %230 }
  0xa1   :  { %v243_v59 = vpop.permute.xlu1 %242 }
  0xf2   :  { %v142_v42 = vpop.f32.mrb[0].mxu0 }
  0xf3   :  { %v143_v43 = vadd.f32 %v142_v42, %v55_v38  ;;  %v213_v44 = vpop.f32.mrb[0].mxu1  ;;  %v144_v45 = vpop.f32.mrb[1].mxu0 }
  0xf4   :  { %v214_v46 = vadd.f32 %v213_v44, %v63_v39  ;;  %v145_v47 = vadd.f32 %v144_v45, %v59_v40  ;;  %v215_v48 = vpop.f32.mrb[1].mxu1 }
  0xf5   :  { %295 = vtanh.f32 %v143_v43  ;;  %v216_v49 = vadd.f32 %v215_v48, %v67_v41 }
  0xf6   :  { %297 = vtanh.f32 %v214_v46 }
  0xf7   :  { %299 = vtanh.f32 %v145_v47 }
  0xf8   :  { %301 = vtanh.f32 %v216_v49 }
  0xff   :  { %v296_v52 = vpop.eup %295 }
 0x100   :  { %v298_v54 = vpop.eup %297  ;;  %v227_v55 = vmul.f32 %v296_v52, %v225_v50 }
 0x101   :  { %v300_v56 = vpop.eup %299  ;;  %v239_v60 = vmul.f32 %v298_v54, %v237_v51 }
 0x102   :  { %v233_v57 = vmul.f32 %v300_v56, %v231_v53  ;;  %v302_v58 = vpop.eup %301 }
 0x103   :  { %v245_v63 = vmul.f32 %v302_v58, %v243_v59 }
 0x104   :  { %v234_v61 = vadd.f32 %v233_v57, %v227_v55 }
 0x106   :  { %v240_v62 = vadd.f32 %v239_v60, %v234_v61 }
 0x108   :  { %v246_v0 = vadd.f32 %v245_v63, %v240_v62 }
 0x10a   :  { %247 = vst [vmem:[#allocation5] sm:$0xff] %v246_v0 }
 0x10b   :  { %336 = shalt.err (!%p333_p12)
}
 0x10c   :  { %s337_s10 = scalar_lea.hbm %s422_s4, 128 }
 0x10d   :  { %p338_p13 = scmp.ne.s32.totalorder %s422_s4, %s337_s10  ;;  %p341_p0 = scmp.lt.u32.totalorder %s337_s10, %s422_s4 }
 0x10f   :  { %p343_p1 = pnand %p341_p0, %p338_p13 }
 0x111   :  { %346 = shalt.err (!%p343_p1)
}
 0x112   :  { %257 = dma.vmem_to_hbm [thread:$0]  %s255_s2, 128, %s422_s4, [#allocation4]  }
 0x113   :  { %349 = dma.done.wait [#allocation4], 128  }
 0x114   :  { %350 = vsyncadd [#allocation4], 4294967168 }
 0x115   :  { %261 = vsyncpa [#allocation3], 1 }
 0x116   :  { %262 = vsyncpa [#allocation4], 1 }

// kernel: tpu_custom_call.1
= control target key start
LH: loop header
LB: loop body
LE: loop exit
PB: predicated region body
PF: predicated region fallthrough
CT: control target
= control target key end

     0   :  { %9 = vsyncpa [#allocation3], 0  ;;  %s418_s0 = inlined_call_operand.vmem [shape: f32[8,32], index: 0, kind: input, shape index: {}]   ;;  %s419_s1 = inlined_call_operand.hbm [shape: f32[32,512], index: 1, kind: input, shape index: {}]   ;;  %s420_s2 = inlined_call_operand.vmem [shape: f32[1,512], index: 2, kind: input, shape index: {}]   ;;  %s421_s3 = inlined_call_operand.vmem [shape: f32[8,4], index: 3, kind: input, shape index: {}]   ;;  %s422_s4 = inlined_call_operand.hbm [shape: f32[8,128], index: 4, kind: output, shape index: {}]  }
   0x1   :  { %10 = vsyncpa [#allocation4], 0  ;;  %s351_s15 = smov [#allocation2]   ;;  %s303_s19 = scalar_lea.hbm %s419_s1, 2048 }
   0x2   :  { %s18_s16 = sshll.u32 %s351_s15, 4  ;;  %p304_p0 = scmp.ne.s32.totalorder %s419_s1, %s303_s19  ;;  %s19_s16 = int_to_ptr.vmem [resolvable:$true] %s18_s16 }
   0x3   :  { %p307_p1 = scmp.lt.u32.totalorder %s303_s19, %s419_s1 }
   0x5   :  { %p309_p2 = pnand %p307_p1, %p304_p0 }
   0x7   :  { %312 = shalt.err (!%p309_p2)
}
   0x8   :  { %s313_s24 = scalar_lea.vmem %s19_s16, 2048  ;;  %p318_p4 = scmp.lt.s32.totalorder %s19_s16, %s19_s16 }
   0x9   :  { %p314_p3 = scmp.ne.s32.totalorder %s19_s16, %s313_s24  ;;  %p319_p5 = scmp.lt.s32.totalorder %s313_s24, %s313_s24 }
   0xb   :  { %p320_p6 = por %p319_p5, %p318_p4 }
   0xd   :  { %p321_p7 = pnand %p320_p6, %p314_p3 }
   0xf   :  { %324 = shalt.err (!%p321_p7)
}
  0x10   :  { %s352_s25 = smov 512   ;;  %s353_s26 = smov 32  }
  0x11   :  { %24 = dma.hbm_to_vmem [thread:$0]  %s419_s1, 2048, %s19_s16, [#allocation3], %s352_s25, %s352_s25, %s353_s26  }
  0x12   :  { %347 = dma.done.wait [#allocation3], 2048  }
  0x13   :  { %348 = vsyncadd [#allocation3], 4294965248  ;;  %v354_v0 = vmov 0.0   ;;  %v355_v1 = vmov 0   ;;  %v356_v2 = vmov 2   ;;  %v35_v3 = vld [vmem:[#allocation2 + $0x8] sm:$0xff]  ;;  %v52_v31 = vlaneseq }
  0x14   :  { %140 = vmatprep.mubr.f32.mxu0 %v354_v0  ;;  %211 = vmatprep.mubr.f32.mxu1 %v354_v0  ;;  %v39_v4 = vld [vmem:[#allocation2 + $0x28] sm:$0xff]  ;;  %v37_v5 = vld [vmem:[#allocation2 + $0x18] sm:$0xff]  ;;  %v34_v8 = vld [vmem:[#allocation2] sm:$0xff]  ;;  %vm72_vm0 = vcmask 261120   ;;  %v357_v29 = vmov 1   ;;  %v358_v30 = vmov 3  }
  0x15   :  { %290 = vset.pattern.permute.xlu0 %v355_v1  ;;  %292 = vset.pattern.permute.xlu1 %v356_v2  ;;  %v265_v6 = vpack.c.bf16 %v39_v4, %v35_v3  ;;  %v41_v7 = vld [vmem:[#allocation2 + $0x38] sm:$0xff]  ;;  %v38_v9 = vld [vmem:[#allocation2 + $0x20] sm:$0xff]  ;;  %v36_v12 = vld [vmem:[#allocation2 + $0x10] sm:$0xff]  ;;  %v53_v32 = vshrl.u32 %v52_v31, 7 }
  0x16   :  { %v273_v10 = vpack.c.bf16 %v41_v7, %v37_v5  ;;  %v267_v11 = vpack.c.bf16 %v38_v9, %v34_v8  ;;  %v40_v13 = vld [vmem:[#allocation2 + $0x30] sm:$0xff]  ;;  %v43_v14 = vld [vmem:[#allocation2 + $0x48] sm:$0xff]  ;;  %v45_v17 = vld [vmem:[#allocation2 + $0x58] sm:$0xff] }
  0x17   :  { %266 = vmatprep.subr.bf16.mxu0 %v265_v6  ;;  %v275_v15 = vpack.c.bf16 %v40_v13, %v36_v12  ;;  %v47_v16 = vld [vmem:[#allocation2 + $0x68] sm:$0xff]  ;;  %v49_v18 = vld [vmem:[#allocation2 + $0x78] sm:$0xff]  ;;  %v42_v21 = vld [vmem:[#allocation2 + $0x40] sm:$0xff]  ;;  %v54_v33 = vsub.s32 0, %v53_v32  ;;  %v62_v35 = vsub.s32 2, %v53_v32  ;;  %v58_v36 = vsub.s32 1, %v53_v32 }
  0x18   :  { %274 = vmatprep.subr.bf16.mxu1 %v273_v10  ;;  %268 = vmatpush1.bf16.msra.mxu0 %v267_v11  ;;  %v269_v19 = vpack.c.bf16 %v47_v16, %v43_v14  ;;  %v277_v20 = vpack.c.bf16 %v49_v18, %v45_v17  ;;  %v46_v22 = vld [vmem:[#allocation2 + $0x60] sm:$0xff]  ;;  %v44_v23 = vld [vmem:[#allocation2 + $0x50] sm:$0xff]  ;;  %v66_v37 = vsub.s32 3, %v53_v32 }
  0x19   :  { %276 = vmatpush1.bf16.msra.mxu1 %v275_v15  ;;  %v271_v24 = vpack.c.bf16 %v46_v22, %v42_v21  ;;  %v48_v25 = vld [vmem:[#allocation2 + $0x70] sm:$0xff]  ;;  %v33_v26 = vld [vmem:[%s421_s3] sm:$0xff] }
  0x1a   :  { %270 = vmatprep.subr.bf16.mxu0 %v269_v19  ;;  %278 = vmatprep.subr.bf16.mxu1 %v277_v20  ;;  %v279_v27 = vpack.c.bf16 %v48_v25, %v44_v23  ;;  %v32_v28 = vld [vmem:[%s418_s0] sm:$0xff]  ;;  %s359_s0 = smov [#allocation5]  }
  0x1b   :  { %224 = vperm.xlu0 %290, %v33_v26   ;;  %236 = vperm.xlu1 %292, %v33_v26   ;;  %v50_v34 = vld [vmem:[%s420_s2] sm:$0xf]  ;;  %s254_s2 = sshll.u32 %s359_s0, 4  ;;  %s255_s2 = int_to_ptr.vmem [resolvable:$true] %s254_s2 }
  0x1c   :  { %272 = vmatpush1.bf16.msra.mxu0 %v271_v24  ;;  %v55_v38 = vrot.slane %v50_v34, %v54_v33  ;;  %v63_v39 = vrot.slane %v50_v34, %v62_v35  ;;  %v59_v40 = vrot.slane %v50_v34, %v58_v36  ;;  %v67_v41 = vrot.slane %v50_v34, %v66_v37  ;;  %s325_s7 = scalar_lea.vmem %s255_s2, 128  ;;  %p330_p9 = scmp.lt.s32.totalorder %s255_s2, %s255_s2 }
  0x1d   :  { %280 = vmatpush1.bf16.msra.mxu1 %v279_v27  ;;  %p326_p8 = scmp.ne.s32.totalorder %s255_s2, %s325_s7  ;;  %p331_p10 = scmp.lt.s32.totalorder %s325_s7, %s325_s7 }
  0x1f   :  { %263 = vmatmul.mubr.msk.f32.vlgmr.msra.gmra.mrb[0].mxu0 %vm72_vm0, %v32_v28  ;;  %291 = vset.pattern.permute.xlu0 %v357_v29  ;;  %p332_p11 = por %p331_p10, %p330_p9 }
  0x20   :  { %264 = vmatmul.mubr.msk.f32.vlgmr.msra.gmra.mrb[0].mxu1 %vm72_vm0, %v32_v28  ;;  %230 = vperm.xlu0 %291, %v33_v26  }
  0x21   :  { %293 = vset.pattern.permute.xlu1 %v358_v30  ;;  %p333_p12 = pnand %p332_p11, %p326_p8 }
  0x22   :  { %242 = vperm.xlu1 %293, %v33_v26  }
  0x24   :  { %294 = vset.pattern.permute.xlu0 %v358_v30 }
  0x9a   :  { %v225_v50 = vpop.permute.xlu0 %224  ;;  %v237_v51 = vpop.permute.xlu1 %236 }
  0x9f   :  { %v231_v53 = vpop.permute.xlu0 %230 }
  0xa1   :  { %v243_v59 = vpop.permute.xlu1 %242 }
  0xf2   :  { %v142_v42 = vpop.f32.mrb[0].mxu0 }
  0xf3   :  { %v143_v43 = vadd.f32 %v142_v42, %v55_v38  ;;  %v213_v44 = vpop.f32.mrb[0].mxu1  ;;  %v144_v45 = vpop.f32.mrb[1].mxu0 }
  0xf4   :  { %v214_v46 = vadd.f32 %v213_v44, %v63_v39  ;;  %v145_v47 = vadd.f32 %v144_v45, %v59_v40  ;;  %v215_v48 = vpop.f32.mrb[1].mxu1 }
  0xf5   :  { %295 = vtanh.f32 %v143_v43  ;;  %v216_v49 = vadd.f32 %v215_v48, %v67_v41 }
  0xf6   :  { %297 = vtanh.f32 %v214_v46 }
  0xf7   :  { %299 = vtanh.f32 %v145_v47 }
  0xf8   :  { %301 = vtanh.f32 %v216_v49 }
  0xff   :  { %v296_v52 = vpop.eup %295 }
 0x100   :  { %v298_v54 = vpop.eup %297  ;;  %v227_v55 = vmul.f32 %v296_v52, %v225_v50 }
 0x101   :  { %v300_v56 = vpop.eup %299  ;;  %v239_v60 = vmul.f32 %v298_v54, %v237_v51 }
 0x102   :  { %v233_v57 = vmul.f32 %v300_v56, %v231_v53  ;;  %v302_v58 = vpop.eup %301 }
 0x103   :  { %v245_v63 = vmul.f32 %v302_v58, %v243_v59 }
 0x104   :  { %v234_v61 = vadd.f32 %v233_v57, %v227_v55 }
 0x106   :  { %v240_v62 = vadd.f32 %v239_v60, %v234_v61 }
 0x108   :  { %v246_v0 = vadd.f32 %v245_v63, %v240_v62 }
 0x10a   :  { %247 = vst [vmem:[#allocation5] sm:$0xff] %v246_v0 }
 0x10b   :  { %336 = shalt.err (!%p333_p12)
}
 0x10c   :  { %s337_s10 = scalar_lea.hbm %s422_s4, 128 }
 0x10d   :  { %p338_p13 = scmp.ne.s32.totalorder %s422_s4, %s337_s10  ;;  %p341_p0 = scmp.lt.u32.totalorder %s337_s10, %s422_s4 }
 0x10f   :  { %p343_p1 = pnand %p341_p0, %p338_p13 }
 0x111   :  { %346 = shalt.err (!%p343_p1)
}
 0x112   :  { %257 = dma.vmem_to_hbm [thread:$0]  %s255_s2, 128, %s422_s4, [#allocation4]  }
 0x113   :  { %349 = dma.done.wait [#allocation4], 128  }
 0x114   :  { %350 = vsyncadd [#allocation4], 4294967168 }
 0x115   :  { %261 = vsyncpa [#allocation3], 1 }
 0x116   :  { %262 = vsyncpa [#allocation4], 1 }

</bundles_post_ra>
